<compile_context>
chip_gen: v5e
topology: v5e:2x2
jax: 0.10.0
libtpu: 0.0.40
codegen_flags: <defaults>
</compile_context>

<pallas_src>
import functools

import jax
import jax.numpy as jnp
from jax.experimental import pallas as pl
from jax.experimental.pallas import tpu as pltpu


def _round_up(x, m):
    return ((x + m - 1) // m) * m


def _cdiv(a, b):
    return -(-a // b)


def _apply_activation(y, activation):
    if activation == "relu":
        return jnp.maximum(y, 0.0)
    elif activation == "sigmoid":
        return jax.nn.sigmoid(y)
    elif activation == "tanh":
        return jnp.tanh(y)
    raise KeyError(activation)


def _td_single_k_kernel(x_ref, w_ref, b_ref, o_ref, *, activation):
    # x_ref: (tm, K)  w_ref: (K, tn)  b_ref: (1, tn)  o_ref: (tm, tn)
    # Single K step: no accumulator scratch, no zero-init, direct store.
    y = jnp.dot(x_ref[...], w_ref[...], preferred_element_type=jnp.float32)
    y = y + b_ref[...].astype(jnp.float32)
    o_ref[...] = _apply_activation(y, activation).astype(o_ref.dtype)


def _td_multi_k_kernel(x_ref, w_ref, b_ref, o_ref, acc_ref, *, activation):
    # P3 pattern: f32 accumulator resident across the K axis (last grid axis).
    k = pl.program_id(2)

    @pl.when(k == 0)
    def _():
        acc_ref[...] = jnp.zeros_like(acc_ref)

    acc_ref[...] += jnp.dot(x_ref[...], w_ref[...],
                            preferred_element_type=jnp.float32)

    @pl.when(k == pl.num_programs(2) - 1)
    def _():
        y = acc_ref[...] + b_ref[...].astype(jnp.float32)
        o_ref[...] = _apply_activation(y, activation).astype(o_ref.dtype)


def _vmem_budget_bytes():
    # Generation-aware budget: ~75% of physical VMEM, capped at 100 MiB
    # (v5e/v6e: 128 MiB -> ~96 MiB usable; v7x: 64 MiB/TC -> 48 MiB).
    try:
        cap = int(pltpu.get_tpu_info().vmem_capacity_bytes)
    except Exception:
        cap = 64 * 1024 * 1024  # v7x-safe fallback
    return min((cap * 3) // 4, 100 * 1024 * 1024)


def time_distributed_linear(x, weight, bias, *, activation="relu",
                            tm=512, tn=2048, tk=1024, compute_dtype=None):
    """TimeDistributed(nn.Linear) forward.

    x:      (B, T, ..., D_in)
    weight: (D_out, D_in)   -- PyTorch nn.Linear layout
    bias:   (D_out,)
    returns (B, -1, D_out)  -- matches y.view(x.size(0), -1, y.size(-1))
    """
    B = x.shape[0]
    D_in = x.shape[-1]
    D_out = weight.shape[0]
    out_dtype = x.dtype

    # Optional bf16 compute (accumulation stays f32); changes numerics vs f32.
    if compute_dtype is not None:
        x = x.astype(compute_dtype)
        weight = weight.astype(compute_dtype)
    dtype = x.dtype
    itemsize = jnp.dtype(dtype).itemsize
    sub = 16 if dtype == jnp.bfloat16 else 8  # min sublane tile

    # Glue: x.contiguous().view(-1, x.size(-1)) -- a reshape view, no copy.
    x2d = x.reshape(-1, D_in)
    M = x2d.shape[0]

    D_in_p = _round_up(D_in, 128)
    D_out_p = _round_up(D_out, 128)

    # --- tile caps, clamped to problem size, then fit to the VMEM budget ----
    tk0 = min(_round_up(max(tk, 128), 128), D_in_p)
    tn0 = min(_round_up(max(tn, 128), 128), D_out_p)
    tm0 = min(_round_up(max(tm, sub), sub), _round_up(M, sub))

    budget = _vmem_budget_bytes()

    def footprint(tm_, tn_, tk_):
        # double-buffered x / w / out tiles + f32 accumulator + bias (conservative)
        return (2 * (tm_ * tk_ + tk_ * tn_ + tm_ * tn_) * itemsize
                + tm_ * tn_ * 4 + 2 * tn_ * itemsize)

    while footprint(tm0, tn0, tk0) > budget:
        if tn0 >= max(tk0, tm0) and tn0 > 128:
            tn0 = max(128, (tn0 // 2 // 128) * 128)
        elif tk0 >= tm0 and tk0 > 128:
            tk0 = max(128, (tk0 // 2 // 128) * 128)
        elif tm0 > sub:
            tm0 = max(sub, (tm0 // 2 // sub) * sub)
        else:
            break

    # --- K (contraction) tiling ---------------------------------------------
    k_tiles = _cdiv(D_in_p, tk0)
    if k_tiles == 1:
        tk_f = D_in        # full-extent K block: no padding / no copy of x
        K_pad = D_in
    else:
        tk_f = _round_up(_cdiv(D_in_p, k_tiles), 128)   # balanced K tiles
        K_pad = k_tiles * tk_f

    # --- N (output feature) tiling -------------------------------------------
    n_tiles = _cdiv(D_out_p, tn0)
    tn_f = _round_up(_cdiv(D_out_p, n_tiles), 128)      # balanced N tiles
    N_pad = n_tiles * tn_f

    # --- M (rows = B*T) tiling: balanced, no padded copy of x ----------------
    m_tiles = _cdiv(M, tm0)
    tm_f = _round_up(_cdiv(M, m_tiles), sub)
    m_tiles = _cdiv(M, tm_f)
    if m_tiles * n_tiles == 1 and M > sub:
        # v7x has 2 TensorCores: make the parallel grid at least 2 wide.
        tm_f = _round_up(_cdiv(M, 2), sub)
        m_tiles = _cdiv(M, tm_f)

    # --- data prep (weight transposed once; only K of x ever padded) ---------
    w_t = weight.T                               # (D_in, D_out), one-time cost
    if (K_pad, N_pad) != (D_in, D_out):
        w_t = jnp.pad(w_t, ((0, K_pad - D_in), (0, N_pad - D_out)))
    b2d = bias.reshape(1, D_out)
    if N_pad != D_out:
        b2d = jnp.pad(b2d, ((0, 0), (0, N_pad - D_out)))
    if K_pad != D_in:                            # only when multi-K & unaligned
        x2d = jnp.pad(x2d, ((0, 0), (0, K_pad - D_in)))

    fp = footprint(tm_f, tn_f, tk_f)
    vmem_limit = int(min(budget, max(32 * 1024 * 1024, fp + (8 << 20))))

    trans = 0 if activation == "relu" else M * D_out
    cost = pl.CostEstimate(
        flops=2 * M * D_in * D_out,
        transcendentals=trans,
        bytes_accessed=(M * D_in + D_in * D_out + D_out + M * D_out) * itemsize)

    # NOTE: the ragged last row-tile feeds out-of-bounds (garbage) rows through
    # the activation; their stores are masked by Pallas, so results are correct
    # (may surface NaNs only under debug checks).
    if k_tiles == 1:
        kernel = functools.partial(_td_single_k_kernel, activation=activation)
        y2d = pl.pallas_call(
            kernel,
            out_shape=jax.ShapeDtypeStruct((M, D_out), out_dtype),
            grid_spec=pltpu.PrefetchScalarGridSpec(
                num_scalar_prefetch=0,
                grid=(m_tiles, n_tiles),
                in_specs=[
                    pl.BlockSpec((tm_f, K_pad), lambda i, j: (i, 0)),  # x rows
                    pl.BlockSpec((K_pad, tn_f), lambda i, j: (0, j)),  # weight
                    pl.BlockSpec((1, tn_f), lambda i, j: (0, j)),      # bias
                ],
                out_specs=pl.BlockSpec((tm_f, tn_f), lambda i, j: (i, j)),
            ),
            compiler_params=pltpu.CompilerParams(
                dimension_semantics=("parallel", "parallel"),
                vmem_limit_bytes=vmem_limit),
            cost_estimate=cost,
        )(x2d, w_t, b2d)
    else:
        kernel = functools.partial(_td_multi_k_kernel, activation=activation)
        y2d = pl.pallas_call(
            kernel,
            out_shape=jax.ShapeDtypeStruct((M, D_out), out_dtype),
            grid_spec=pltpu.PrefetchScalarGridSpec(
                num_scalar_prefetch=0,
                grid=(m_tiles, n_tiles, k_tiles),
                in_specs=[
                    pl.BlockSpec((tm_f, tk_f), lambda i, j, k: (i, k)),  # x
                    pl.BlockSpec((tk_f, tn_f), lambda i, j, k: (k, j)),  # weight
                    pl.BlockSpec((1, tn_f), lambda i, j, k: (0, j)),     # bias
                ],
                out_specs=pl.BlockSpec((tm_f, tn_f), lambda i, j, k: (i, j)),
                scratch_shapes=[pltpu.VMEM((tm_f, tn_f), jnp.float32)],
            ),
            compiler_params=pltpu.CompilerParams(
                dimension_semantics=("parallel", "parallel", "arbitrary"),
                vmem_limit_bytes=vmem_limit),
            cost_estimate=cost,
        )(x2d, w_t, b2d)

    # Glue: y.view(x.size(0), -1, y.size(-1))
    return y2d.reshape(B, -1, D_out)


def _reference(x, weight, bias, activation="relu"):
    y = x.reshape(-1, x.shape[-1]) @ weight.T + bias
    y = _apply_activation(y, activation)
    return y.reshape(x.shape[0], -1, weight.shape[0])


if __name__ == "__main__":
    key = jax.random.PRNGKey(0)
    k_x, k_w, k_b = jax.random.split(key, 3)

    # Shapes implied by the module: (batch, seq, hidden) through nn.Linear.
    B, T, D_in, D_out = 2, 8, 32, 32
    x = jax.random.normal(k_x, (B, T, D_in), dtype=jnp.float32)
    bound = 1.0 / (D_in ** 0.5)
    weight = jax.random.uniform(k_w, (D_out, D_in), minval=-bound, maxval=bound,
                                dtype=jnp.float32)
    bias = jax.random.uniform(k_b, (D_out,), minval=-bound, maxval=bound,
                              dtype=jnp.float32)

    y = jax.block_until_ready(
        time_distributed_linear(x, weight, bias, activation="relu"))
    y_ref = _reference(x, weight, bias, activation="relu")
    assert y.shape == (B, T, D_out), y.shape
    assert jnp.allclose(y, y_ref, atol=1e-5, rtol=1e-5), "relu mismatch"

    # Non tile-aligned shapes + the other activations (single-K fast path,
    # ragged last row tile, masked N-boundary stores).
    for act in ("sigmoid", "tanh"):
        x2 = jax.random.normal(k_x, (3, 7, 50), dtype=jnp.float32)
        w2 = jax.random.uniform(k_w, (70, 50), minval=-0.1, maxval=0.1,
                                dtype=jnp.float32)
        b2 = jax.random.uniform(k_b, (70,), minval=-0.1, maxval=0.1,
                                dtype=jnp.float32)
        y2 = jax.block_until_ready(
            time_distributed_linear(x2, w2, b2, activation=act))
        assert jnp.allclose(y2, _reference(x2, w2, b2, act),
                            atol=1e-5, rtol=1e-5), act

    # Force the multi-K accumulator path (and multiple N tiles) with small caps.
    x3 = jax.random.normal(k_x, (2, 64, 256), dtype=jnp.float32)
    w3 = jax.random.uniform(k_w, (192, 256), minval=-0.05, maxval=0.05,
                            dtype=jnp.float32)
    b3 = jax.random.uniform(k_b, (192,), minval=-0.05, maxval=0.05,
                            dtype=jnp.float32)
    y3 = jax.block_until_ready(
        time_distributed_linear(x3, w3, b3, activation="relu", tn=128, tk=128))
    assert jnp.allclose(y3, _reference(x3, w3, b3, "relu"),
                        atol=1e-4, rtol=1e-4), "multi-K mismatch"

    print("KERNEL_OK")
</pallas_src>

<mosaic_0001>
module attributes {stable_mosaic.version = 11 : i64} {
  func.func @_td_single_k_kernel(%arg0: i32, %arg1: i32, %arg2: memref<8x32xf32, #tpu.memory_space<vmem>>, %arg3: memref<32x128xf32, #tpu.memory_space<vmem>>, %arg4: memref<1x128xf32, #tpu.memory_space<vmem>>, %arg5: memref<8x128xf32, #tpu.memory_space<vmem>>) attributes {dimension_semantics = [#tpu.dimension_semantics<parallel>, #tpu.dimension_semantics<parallel>], iteration_bounds = array<i64: 2, 1>, scalar_prefetch = 0 : i64, scratch_operands = 0 : i64, tpu.core_type = #tpu.core_type<tc>, window_params = [{transform_indices = @transform_0, window_bounds = array<i64: 8, 32>}, {transform_indices = @transform_1, window_bounds = array<i64: 32, 128>}, {transform_indices = @transform_2, window_bounds = array<i64: 1, 128>}, {transform_indices = @transform_3, window_bounds = array<i64: 8, 128>}]} {
    %c0 = arith.constant 0 : index
    %c0_0 = arith.constant 0 : index
    %0 = vector.load %arg2[%c0, %c0_0] : memref<8x32xf32, #tpu.memory_space<vmem>>, vector<8x32xf32>
    %c0_1 = arith.constant 0 : index
    %c0_2 = arith.constant 0 : index
    %1 = vector.load %arg3[%c0_1, %c0_2] : memref<32x128xf32, #tpu.memory_space<vmem>>, vector<32x128xf32>
    %cst = arith.constant dense<0.000000e+00> : vector<8x128xf32>
    %2 = tpu.matmul %0, %1, %cst {dimension_numbers = #tpu.dot_dimension_numbers<[1], [0], [0], [1], [0, 0, 1, 1], [], []>} : vector<8x32xf32>, vector<32x128xf32>, vector<8x128xf32> -> vector<8x128xf32>
    %c0_3 = arith.constant 0 : index
    %c0_4 = arith.constant 0 : index
    %3 = vector.load %arg4[%c0_3, %c0_4] : memref<1x128xf32, #tpu.memory_space<vmem>>, vector<1x128xf32>
    %4 = vector.broadcast %3 : vector<1x128xf32> to vector<8x128xf32>
    %5 = arith.addf %2, %4 : vector<8x128xf32>
    %cst_5 = arith.constant 0.000000e+00 : f32
    %6 = vector.broadcast %cst_5 : f32 to vector<8x128xf32>
    %7 = arith.maximumf %5, %6 : vector<8x128xf32>
    %c0_6 = arith.constant 0 : index
    %c0_7 = arith.constant 0 : index
    %8 = vector.load %arg5[%c0_6, %c0_7] : memref<8x128xf32, #tpu.memory_space<vmem>>, vector<8x128xf32>
    tpu.vector_store %arg5[%c0_6, %c0_7], %7 {strides = array<i32>} : memref<8x128xf32, #tpu.memory_space<vmem>>, vector<8x128xf32>,
    return
  }
  func.func @transform_0(%arg0: i32, %arg1: i32) -> (i32, i32) {
    %c0_i32 = arith.constant 0 : i32
    %c0_i32_0 = arith.constant 0 : i32
    return %arg0, %c0_i32 : i32, i32
  }
  func.func @transform_1(%arg0: i32, %arg1: i32) -> (i32, i32) {
    %c0_i32 = arith.constant 0 : i32
    %c0_i32_0 = arith.constant 0 : i32
    return %c0_i32, %arg1 : i32, i32
  }
  func.func @transform_2(%arg0: i32, %arg1: i32) -> (i32, i32) {
    %c0_i32 = arith.constant 0 : i32
    %c0_i32_0 = arith.constant 0 : i32
    return %c0_i32, %arg1 : i32, i32
  }
  func.func @transform_3(%arg0: i32, %arg1: i32) -> (i32, i32) {
    %c0_i32 = arith.constant 0 : i32
    return %arg0, %arg1 : i32, i32
  }
}

</mosaic_0001>

<bundles_post_ra>
// kernel: tpu_custom_call.1
= control target key start
LH: loop header
LB: loop body
LE: loop exit
PB: predicated region body
PF: predicated region fallthrough
CT: control target
= control target key end

     0   :  { %8 = vsyncpa [#allocation3], 0  ;;  %s805_s0 = inlined_call_operand.hbm [shape: f32[16,32], index: 0, kind: input, shape index: {}]   ;;  %s806_s1 = inlined_call_operand.hbm [shape: f32[32,128], index: 1, kind: input, shape index: {}]   ;;  %s807_s2 = inlined_call_operand.vmem [shape: f32[1,128], index: 2, kind: input, shape index: {}]   ;;  %s808_s3 = inlined_call_operand.hbm [shape: f32[16,32], index: 3, kind: output, shape index: {}]  }
   0x1   :  { %10 = vsyncpa [#allocation3 + $0x1], 0 }
   0x2   :  { %11 = vsyncpa [#allocation6], 0 }
   0x3   :  { %12 = vsyncpa [#allocation4], 0 }
   0x4   :  { %14 = vsyncpa [#allocation4 + $0x1], 0  ;;  %s659_s12 = smov 0   ;;  %s661_s13 = smov 0  }
   0x5   :  { %s663_s14 = smov 0   ;;  %s665_s15 = smov 0  }
   0x6   :  { %s667_s16 = smov 0   ;;  %s669_s17 = smov 0  }
   0x7 LB: > { %s395_s18 = sadd.s32 4294967295, %s634_s17   ;;  %p397_p0 = scmp.ge.s32.totalorder %s634_s17, 1  ;;  %s634_s17 = sphi %s669_s17, %s20_s17   ;;  %s630_s16 = sphi %s667_s16, %s819_s16   ;;  %s626_s15 = sphi %s665_s15, %s818_s15   ;;  %s622_s14 = sphi %s663_s14, %s817_s14   ;;  %s618_s13 = sphi %s661_s13, %s816_s13   ;;  %s614_s12 = sphi %s659_s12, %s815_s12  }
   0x8   : > { %p691_p1 = scmp.eq.s32.totalorder %s395_s18, 0  ;;  %p143_p2 = scmp.lt.s32.totalorder %s634_s17, 3 }
   0x9   : > { %s156_s22 = sshll.u32 %s806_s1, 4  ;;  %s636_s24 = smov [#allocation5]   ;;  %s157_s22 = int_to_ptr.hbm [resolvable:$true] %s156_s22 }
   0xa   : > { %p699_p3 = pnand %p397_p0, %p143_p2  ;;  %s158_s25 = sshll.u32 %s636_s24, 4  ;;  %s159_s25 = int_to_ptr.vmem [resolvable:$true] %s158_s25 }
   0xb   : > { %p400_p6 = scmp.ge.s32.totalorder %s634_s17, 2  ;;  %s637_s26 = smov 128  }
   0xc   : > { %p420_p4 = pneg %p699_p3  ;;  %s638_s27 = smov 8  }
   0xd   : > { %s396_s28 = sadd.s32 4294967294, %s634_s17   ;;  %s32_s29 = sadd.s32 1, %s630_s16 }
   0xe   : > { %p421_p5 = pnand %p420_p4, %p691_p1  ;;  %s39_s30 = sadd.s32 1, %s622_s14 }
   0xf   : > { %p34_p7 = scmp.ge.s32.totalorder %s32_s29, 2  ;;  %p46_p8 = scmp.ne.s32.totalorder %s622_s14, %s618_s13 }
  0x10   : > { %423 = dma.hbm_to_vmem [thread:$0]  (!%p421_p5), %s157_s22, 512, %s159_s25, [#allocation6], %s637_s26, %s637_s26, %s638_s27  }
  0x11   : > { %p47_p9 = scmp.eq.s32.totalorder %s634_s17, 0  ;;  %p52_p10 = scmp.ne.s32.totalorder %s618_s13, %s614_s12 }
  0x12   : > { %s821_s29 = smov (%p34_p7, %s32_s29), 0  ;;  %p130_p13 = scmp.eq.s32.totalorder %s395_s18, 1 }
  0x13   : > { %p718_p11 = por %p47_p9, %p46_p8  ;;  %p724_p12 = por %p691_p1, %p52_p10 }
  0x14   : > { %s36_s6 = ssub.s32 %s630_s16, %s821_s29  ;;  %p136_p2 = scmp.eq.s32.totalorder %s396_s28, 1 }
  0x15   : > { %p37_p0 = scmp.eq.s32.totalorder %s36_s6, 0  ;;  %p730_p4 = por %p130_p13, %p46_p8 }
  0x16   : > { %p433_p5 = scmp.lt.s32.totalorder %s634_s17, 2  ;;  %p738_p7 = por %p136_p2, %p52_p10 }
  0x17   : > { %s736_s8 = scalar_select %p37_p0, %s622_s14, %s39_s30  }
  0x18   : > { %s178_s10 = sand.u32 1, %s622_s14   ;;  %s402_s20 = sshll.u32 %s630_s16, 3 }
  0x19   : > { %s401_s11 = sshll.u32 %s178_s10, 3  ;;  %s186_s18 = scalar_lea.hbm %s805_s0, %s402_s20 }
  0x1a   : > { %s182_s24 = scalar_lea.vmem [#allocation2], %s401_s11  ;;  %s188_s26 = sshll.u32 %s186_s18, 4  ;;  %s189_s26 = int_to_ptr.hbm [resolvable:$true] %s188_s26 }
  0x1b   : > { %s190_s25 = sshll.u32 %s182_s24, 4  ;;  %p425_p8 = pnand %p433_p5, %p718_p11  ;;  %s191_s25 = int_to_ptr.vmem [resolvable:$true] %s190_s25 }
  0x1c   : > { %s179_s27 = scalar_lea.sflag [#allocation3], %s178_s10  ;;  %199 = sbr.rel (%p699_p3) target bundleno = 177 (0xb1), region = 32 }
  0x1d   : > { %427 = dma.hbm_to_vmem [thread:$0]  (!%p425_p8), %s189_s26, 128, %s191_s25, %s179_s27  }
  0x1e   : > { %s752_s28 = sand.u32 (!%p699_p3), 1, %s618_s13  }
  0x1f   : > { %s404_s30 = sshll.u32 (!%p699_p3), %s752_s28, 3  ;;  %s202_s6 = scalar_lea.sflag (!%p699_p3), [#allocation3], %s752_s28 }
  0x20   : > { %s205_s11 = scalar_lea.vmem (!%p699_p3), [#allocation2], %s404_s30 }
  0x21   : > { %601 = dma.done.wait (%p724_p12), %s202_s6, 128  }
  0x22   : > { %603 = vsyncadd (%p724_p12), %s202_s6, 4294967168 }
  0x23   : > { %605 = dma.done.wait (%p691_p1), [#allocation6], 512  }
  0x24   : > { %607 = vsyncadd (%p691_p1), [#allocation6], 4294966784  ;;  %v244_v0 = vld [vmem:[#allocation5 + $0x18] sm:$0xff]  ;;  %v243_v1 = vld [vmem:[#allocation5 + $0x10] sm:$0xff]  ;;  %vm249_vm0 = vcmask 261120   ;;  %s409_s23 = sshll.u32 %s626_s15, 3 }
  0x25   : > { %265 = vmatpush.msra.mxu0 %v244_v0  ;;  %v242_v2 = vld [vmem:[#allocation5 + $0x8] sm:$0xff]  ;;  %v241_v3 = vld [vmem:[#allocation5] sm:$0xff]  ;;  %v240_v4 = vld [vmem:[%s205_s11] sm:$0xff]  ;;  %s287_s20 = scalar_lea.hbm %s808_s3, %s409_s23  ;;  %s236_s21 = scalar_lea.vmem [#allocation7], %s404_s30 }
  0x26   : > { %v487_v5 = vld [vmem:[%s807_s2] ss:$0 sm:$0xff]  ;;  %s289_s22 = sshll.u32 %s236_s21, 4  ;;  %s291_s18 = sshll.u32 %s287_s20, 4  ;;  %s290_s22 = int_to_ptr.vmem [resolvable:$true] %s289_s22  ;;  %s292_s18 = int_to_ptr.hbm [resolvable:$true] %s291_s18 }
  0x27   : > { %266 = vmatpush.msra.mxu0 %v243_v1  ;;  %s276_s24 = scalar_lea.sflag [#allocation4], %s752_s28  ;;  %s562_s15 = sshra.s32 %s292_s18, 4  ;;  %s563_s15 = int_to_ptr.hbm [resolvable:$true] %s562_s15 }
  0x28   : > { %s564_s25 = scalar_lea.hbm %s563_s15, 8  ;;  %s568_s6 = scalar_lea.hbm %s808_s3, 16 }
  0x29   : > { %267 = vmatpush.msra.mxu0 %v242_v2  ;;  %p565_p1 = scmp.ne.s32.totalorder %s563_s15, %s564_s25  ;;  %p569_p10 = scmp.lt.s32.totalorder %s563_s15, %s808_s3 }
  0x2a   : > { %p570_p11 = scmp.lt.s32.totalorder %s568_s6, %s564_s25 }
  0x2b   : > { %268 = vmatpush.msra.mxu0 %v241_v3  ;;  %p566_p3 = pnand %p565_p1, %p730_p4 }
  0x2c   : > { %407 = vmatmul.msk.f32.vlgmr.msra.gmra.mxu0 %vm249_vm0, %v240_v4  ;;  %p571_p12 = por %p570_p11, %p569_p10 }
  0x2d   : > { %p567_p9 = pneg %p566_p3 }
  0x2f   : > { %p572_p13 = pnand %p571_p12, %p567_p9 }
  0xa9   : > { %v270_v6 = vpop.f32.mrf.mxu0 }
  0xaa   : > { %v271_v7 = vadd.f32 %v487_v5, %v270_v6 }
  0xac   : > { %v273_v8 = vmax.f32 %v271_v7, 0.0 }
  0xae   : > { %274 = vst [vmem:[%s236_s21] sm:$0xff] %v273_v8 }
  0xaf   : > { %575 = shalt.err (!%p572_p13)
}
  0xb0   : > { %418 = dma.vmem_to_hbm [thread:$0]  (%p730_p4), %s290_s22, 128, %s292_s18, %s276_s24  }
  0xb1 PF: > { %s303_s28 = sand.u32 1, %s614_s12   ;;  %p429_p0 = pnand %p400_p6, %p738_p7 }
  0xb2   : > { %s304_s23 = scalar_lea.sflag [#allocation4], %s303_s28 }
  0xb3   : > { %p430_p2 = pneg %p429_p0 }
  0xb5   : > { %609 = dma.done.wait (%p430_p2), %s304_s23, 128  }
  0xb6   : > { %611 = vsyncadd (%p430_p2), %s304_s23, 4294967168  ;;  %s20_s17 = sadd.s32 1, %s634_s17   ;;  %s815_s12 = smov %s618_s13 }
  0xb7   : > { %p17_p5 = scmp.ge.s32.totalorder %s20_s17, 4   ;;  %s816_s13 = smov %s622_s14 }
  0xb8   : > { %s817_s14 = smov %s736_s8  ;;  %s818_s15 = smov %s630_s16 }
  0xb9   : > { %s819_s16 = smov %s821_s29  ;;  %19 = sbr.rel (!%p17_p5) target bundleno = 7 (0x7), region = 85 }
  0xbe   :  { %310 = vsyncpa [#allocation3], 1 }
  0xbf   :  { %312 = vsyncpa [#allocation3 + $0x1], 1 }
  0xc0   :  { %313 = vsyncpa [#allocation6], 1 }
  0xc1   :  { %314 = vsyncpa [#allocation4], 1 }
  0xc2   :  { %316 = vsyncpa [#allocation4 + $0x1], 1 }

</bundles_post_ra>
